<compile_context>
chip_gen: v5e
topology: v5e:2x2
jax: 0.10.0
libtpu: 0.0.40
codegen_flags: <defaults>
</compile_context>

<pallas_src>
import jax
import jax.numpy as jnp
from jax.experimental import pallas as pl
from jax.experimental.pallas import tpu as pltpu

# ---------------- problem configuration (matches the nn.Module) -------------
N, C_IN, L = 1, 6, 5
C_OUT = 2
K = 3
PAD = 1
STRIDE = 2
GROUPS = 2                      # see TODO(synk) above
EPS = 1e-5
T_OUT = (L + 2 * PAD - K) // STRIDE + 1          # = 3
CPG = C_IN // GROUPS            # in-channels per group  = 3
OPG = C_OUT // GROUPS           # out-channels per group = 1


# ---------------------------- Pallas kernel ---------------------------------
def conv_bn_double_kernel(xt_ref, w_ref, o_ref):
    # xt_ref: (K, C_IN, T_OUT) f32 VMEM   tap-major slabs: xt[k,c,t] = x_pad[c, t*STRIDE+k]
    # w_ref : (C_OUT*CPG*K,)   f32 SMEM   flat grouped-conv weights (scalar reads)
    # o_ref : (1, C_OUT, T_OUT) f32 VMEM
    sub = jax.lax.broadcasted_iota(jnp.int32, (C_IN, T_OUT), 0)   # sublane ids

    # Tap-major MAC: acc[c, t] = sum_k w[c//CPG, c%CPG, k] * x_pad[c, t*STRIDE+k].
    # All elementwise on the VPU; weight "columns" are built from SMEM scalars
    # with cheap selects (no vector weight loads, no cross-lane work).
    acc = jnp.zeros((C_IN, T_OUT), jnp.float32)
    for k in range(K):                       # 3 taps, static
        wtap = jnp.zeros((C_IN, T_OUT), jnp.float32)
        for c in range(C_IN):                # 6 scalar reads, static
            # flat index: (o*CPG + c_local)*K + k == c*K + k  (since OPG == 1)
            wtap = jnp.where(sub == c, w_ref[c * K + k], wtap)
        acc = acc + xt_ref[k] * wtap         # (C_IN, T_OUT) fused mul-add

    # Grouped conv finish: one sublane reduce over CPG rows per group.
    y = jnp.concatenate(
        [jnp.sum(acc[g * CPG:(g + 1) * CPG, :], axis=0, keepdims=True)
         for g in range(GROUPS)],
        axis=0)                              # (C_OUT, T_OUT)

    # BatchNorm1d (affine=False, batch statistics, biased variance), two-pass
    # variance for numerical safety; the final s2 + s2 folded into the scale.
    inv_n = 1.0 / float(N * T_OUT)
    mean = jnp.sum(y, axis=1, keepdims=True) * inv_n               # (C_OUT, 1)
    d = y - mean
    var = jnp.sum(d * d, axis=1, keepdims=True) * inv_n            # (C_OUT, 1)
    scale = 2.0 * jax.lax.rsqrt(var + EPS)                          # EUP
    o_ref[0] = (d * scale).astype(o_ref.dtype)


@jax.jit
def model_forward(x, w_grouped):
    # Wrapper-side prep (a few dozen floats, fused by XLA):
    #   * zero-pad the length axis so every conv window is full-width/aligned,
    #   * materialize the K tap-strided views so the kernel only does full,
    #     aligned block loads (no in-kernel strided/masked slicing).
    x_pad = jnp.pad(x[0], ((0, 0), (PAD, PAD)))                     # (C_IN, L+2)
    span = STRIDE * (T_OUT - 1) + 1
    xt = jnp.stack([x_pad[:, k:k + span:STRIDE] for k in range(K)], axis=0)
    # xt: (K, C_IN, T_OUT)
    w_flat = w_grouped.reshape(-1)                                  # (18,) -> SMEM

    # Gridless pallas_call: the whole problem fits in a fraction of one vreg,
    # so a grid / megacore split / MXU would only add fixed overhead.
    return pl.pallas_call(
        conv_bn_double_kernel,
        out_shape=jax.ShapeDtypeStruct((1, C_OUT, T_OUT), jnp.float32),
        in_specs=[
            pl.BlockSpec(memory_space=pltpu.MemorySpace.VMEM),
            pl.BlockSpec(memory_space=pltpu.MemorySpace.SMEM),
        ],
        out_specs=pl.BlockSpec(memory_space=pltpu.MemorySpace.VMEM),
    )(xt, w_flat)


# ------------------------- pure-JAX reference --------------------------------
def reference_forward(x, w_grouped):
    y = jax.lax.conv_general_dilated(
        x, w_grouped,
        window_strides=(STRIDE,), padding=[(PAD, PAD)],
        dimension_numbers=("NCH", "OIH", "NCH"),
        feature_group_count=GROUPS)                # (N, C_OUT, T_OUT)
    mean = jnp.mean(y, axis=(0, 2), keepdims=True)
    var = jnp.mean((y - mean) ** 2, axis=(0, 2), keepdims=True)
    y_bn = (y - mean) / jnp.sqrt(var + EPS)
    return y_bn + y_bn


# --------------------------------- main --------------------------------------
if __name__ == "__main__":
    key = jax.random.PRNGKey(0)
    kx, kw = jax.random.split(key)

    # input matching torch.randn(1, 6, 5)
    x2 = jax.random.normal(kx, (N, C_IN, L), dtype=jnp.float32)

    # Conv1d weight (out_channels, in_channels // groups, kernel) -- synthetic
    # deterministic init (no checkpoint load).
    fan_in = CPG * K
    bound = 1.0 / jnp.sqrt(fan_in)
    w_grouped = jax.random.uniform(
        kw, (C_OUT, CPG, K), dtype=jnp.float32, minval=-bound, maxval=bound)

    out = model_forward(x2, w_grouped)
    out = jax.block_until_ready(out)

    ref = reference_forward(x2, w_grouped)
    assert out.shape == (1, C_OUT, T_OUT), out.shape
    assert jnp.allclose(out, ref, atol=1e-4, rtol=1e-4), (out, ref)

    print("KERNEL_OK")
</pallas_src>

<mosaic_0001>
module attributes {stable_mosaic.version = 11 : i64} {
  func.func @conv_bn_double_kernel(%arg0: memref<3x6x3xf32, #tpu.memory_space<vmem>>, %arg1: memref<18xf32, #tpu.memory_space<smem>>, %arg2: memref<1x2x3xf32, #tpu.memory_space<vmem>>) attributes {dimension_semantics = [], scalar_prefetch = 0 : i64, scratch_operands = 0 : i64, tpu.core_type = #tpu.core_type<tc>} {
    %0 = tpu.iota {dimensions = array<i32: 0>} : vector<6x3xi32>
    %cst = arith.constant 0.000000e+00 : f32
    %1 = vector.broadcast %cst : f32 to vector<6x3xf32>
    %cst_0 = arith.constant 0.000000e+00 : f32
    %2 = vector.broadcast %cst_0 : f32 to vector<6x3xf32>
    %c0_i32 = arith.constant 0 : i32
    %3 = vector.broadcast %c0_i32 : i32 to vector<6x3xi32>
    %4 = arith.cmpi eq, %0, %3 : vector<6x3xi32>
    %c0 = arith.constant 0 : index
    %5 = memref.load %arg1[%c0] : memref<18xf32, #tpu.memory_space<smem>>
    %6 = vector.broadcast %5 : f32 to vector<6x3xf32>
    %7 = arith.select %4, %6, %2 : vector<6x3xi1>, vector<6x3xf32>
    %c1_i32 = arith.constant 1 : i32
    %8 = vector.broadcast %c1_i32 : i32 to vector<6x3xi32>
    %9 = arith.cmpi eq, %0, %8 : vector<6x3xi32>
    %c3 = arith.constant 3 : index
    %10 = memref.load %arg1[%c3] : memref<18xf32, #tpu.memory_space<smem>>
    %11 = vector.broadcast %10 : f32 to vector<6x3xf32>
    %12 = arith.select %9, %11, %7 : vector<6x3xi1>, vector<6x3xf32>
    %c2_i32 = arith.constant 2 : i32
    %13 = vector.broadcast %c2_i32 : i32 to vector<6x3xi32>
    %14 = arith.cmpi eq, %0, %13 : vector<6x3xi32>
    %c6 = arith.constant 6 : index
    %15 = memref.load %arg1[%c6] : memref<18xf32, #tpu.memory_space<smem>>
    %16 = vector.broadcast %15 : f32 to vector<6x3xf32>
    %17 = arith.select %14, %16, %12 : vector<6x3xi1>, vector<6x3xf32>
    %c3_i32 = arith.constant 3 : i32
    %18 = vector.broadcast %c3_i32 : i32 to vector<6x3xi32>
    %19 = arith.cmpi eq, %0, %18 : vector<6x3xi32>
    %c9 = arith.constant 9 : index
    %20 = memref.load %arg1[%c9] : memref<18xf32, #tpu.memory_space<smem>>
    %21 = vector.broadcast %20 : f32 to vector<6x3xf32>
    %22 = arith.select %19, %21, %17 : vector<6x3xi1>, vector<6x3xf32>
    %c4_i32 = arith.constant 4 : i32
    %23 = vector.broadcast %c4_i32 : i32 to vector<6x3xi32>
    %24 = arith.cmpi eq, %0, %23 : vector<6x3xi32>
    %c12 = arith.constant 12 : index
    %25 = memref.load %arg1[%c12] : memref<18xf32, #tpu.memory_space<smem>>
    %26 = vector.broadcast %25 : f32 to vector<6x3xf32>
    %27 = arith.select %24, %26, %22 : vector<6x3xi1>, vector<6x3xf32>
    %c5_i32 = arith.constant 5 : i32
    %28 = vector.broadcast %c5_i32 : i32 to vector<6x3xi32>
    %29 = arith.cmpi eq, %0, %28 : vector<6x3xi32>
    %c15 = arith.constant 15 : index
    %30 = memref.load %arg1[%c15] : memref<18xf32, #tpu.memory_space<smem>>
    %31 = vector.broadcast %30 : f32 to vector<6x3xf32>
    %32 = arith.select %29, %31, %27 : vector<6x3xi1>, vector<6x3xf32>
    %c0_1 = arith.constant 0 : index
    %c0_2 = arith.constant 0 : index
    %c0_3 = arith.constant 0 : index
    %33 = vector.load %arg0[%c0_1, %c0_2, %c0_3] : memref<3x6x3xf32, #tpu.memory_space<vmem>>, vector<1x6x3xf32>
    %34 = vector.shape_cast %33 : vector<1x6x3xf32> to vector<6x3xf32>
    %35 = arith.mulf %34, %32 : vector<6x3xf32>
    %36 = arith.addf %1, %35 : vector<6x3xf32>
    %cst_4 = arith.constant 0.000000e+00 : f32
    %37 = vector.broadcast %cst_4 : f32 to vector<6x3xf32>
    %c0_i32_5 = arith.constant 0 : i32
    %38 = vector.broadcast %c0_i32_5 : i32 to vector<6x3xi32>
    %39 = arith.cmpi eq, %0, %38 : vector<6x3xi32>
    %c1 = arith.constant 1 : index
    %40 = memref.load %arg1[%c1] : memref<18xf32, #tpu.memory_space<smem>>
    %41 = vector.broadcast %40 : f32 to vector<6x3xf32>
    %42 = arith.select %39, %41, %37 : vector<6x3xi1>, vector<6x3xf32>
    %c1_i32_6 = arith.constant 1 : i32
    %43 = vector.broadcast %c1_i32_6 : i32 to vector<6x3xi32>
    %44 = arith.cmpi eq, %0, %43 : vector<6x3xi32>
    %c4 = arith.constant 4 : index
    %45 = memref.load %arg1[%c4] : memref<18xf32, #tpu.memory_space<smem>>
    %46 = vector.broadcast %45 : f32 to vector<6x3xf32>
    %47 = arith.select %44, %46, %42 : vector<6x3xi1>, vector<6x3xf32>
    %c2_i32_7 = arith.constant 2 : i32
    %48 = vector.broadcast %c2_i32_7 : i32 to vector<6x3xi32>
    %49 = arith.cmpi eq, %0, %48 : vector<6x3xi32>
    %c7 = arith.constant 7 : index
    %50 = memref.load %arg1[%c7] : memref<18xf32, #tpu.memory_space<smem>>
    %51 = vector.broadcast %50 : f32 to vector<6x3xf32>
    %52 = arith.select %49, %51, %47 : vector<6x3xi1>, vector<6x3xf32>
    %c3_i32_8 = arith.constant 3 : i32
    %53 = vector.broadcast %c3_i32_8 : i32 to vector<6x3xi32>
    %54 = arith.cmpi eq, %0, %53 : vector<6x3xi32>
    %c10 = arith.constant 10 : index
    %55 = memref.load %arg1[%c10] : memref<18xf32, #tpu.memory_space<smem>>
    %56 = vector.broadcast %55 : f32 to vector<6x3xf32>
    %57 = arith.select %54, %56, %52 : vector<6x3xi1>, vector<6x3xf32>
    %c4_i32_9 = arith.constant 4 : i32
    %58 = vector.broadcast %c4_i32_9 : i32 to vector<6x3xi32>
    %59 = arith.cmpi eq, %0, %58 : vector<6x3xi32>
    %c13 = arith.constant 13 : index
    %60 = memref.load %arg1[%c13] : memref<18xf32, #tpu.memory_space<smem>>
    %61 = vector.broadcast %60 : f32 to vector<6x3xf32>
    %62 = arith.select %59, %61, %57 : vector<6x3xi1>, vector<6x3xf32>
    %c5_i32_10 = arith.constant 5 : i32
    %63 = vector.broadcast %c5_i32_10 : i32 to vector<6x3xi32>
    %64 = arith.cmpi eq, %0, %63 : vector<6x3xi32>
    %c16 = arith.constant 16 : index
    %65 = memref.load %arg1[%c16] : memref<18xf32, #tpu.memory_space<smem>>
    %66 = vector.broadcast %65 : f32 to vector<6x3xf32>
    %67 = arith.select %64, %66, %62 : vector<6x3xi1>, vector<6x3xf32>
    %c1_11 = arith.constant 1 : index
    %c0_12 = arith.constant 0 : index
    %c0_13 = arith.constant 0 : index
    %68 = vector.load %arg0[%c1_11, %c0_12, %c0_13] : memref<3x6x3xf32, #tpu.memory_space<vmem>>, vector<1x6x3xf32>
    %69 = vector.shape_cast %68 : vector<1x6x3xf32> to vector<6x3xf32>
    %70 = arith.mulf %69, %67 : vector<6x3xf32>
    %71 = arith.addf %36, %70 : vector<6x3xf32>
    %cst_14 = arith.constant 0.000000e+00 : f32
    %72 = vector.broadcast %cst_14 : f32 to vector<6x3xf32>
    %c0_i32_15 = arith.constant 0 : i32
    %73 = vector.broadcast %c0_i32_15 : i32 to vector<6x3xi32>
    %74 = arith.cmpi eq, %0, %73 : vector<6x3xi32>
    %c2 = arith.constant 2 : index
    %75 = memref.load %arg1[%c2] : memref<18xf32, #tpu.memory_space<smem>>
    %76 = vector.broadcast %75 : f32 to vector<6x3xf32>
    %77 = arith.select %74, %76, %72 : vector<6x3xi1>, vector<6x3xf32>
    %c1_i32_16 = arith.constant 1 : i32
    %78 = vector.broadcast %c1_i32_16 : i32 to vector<6x3xi32>
    %79 = arith.cmpi eq, %0, %78 : vector<6x3xi32>
    %c5 = arith.constant 5 : index
    %80 = memref.load %arg1[%c5] : memref<18xf32, #tpu.memory_space<smem>>
    %81 = vector.broadcast %80 : f32 to vector<6x3xf32>
    %82 = arith.select %79, %81, %77 : vector<6x3xi1>, vector<6x3xf32>
    %c2_i32_17 = arith.constant 2 : i32
    %83 = vector.broadcast %c2_i32_17 : i32 to vector<6x3xi32>
    %84 = arith.cmpi eq, %0, %83 : vector<6x3xi32>
    %c8 = arith.constant 8 : index
    %85 = memref.load %arg1[%c8] : memref<18xf32, #tpu.memory_space<smem>>
    %86 = vector.broadcast %85 : f32 to vector<6x3xf32>
    %87 = arith.select %84, %86, %82 : vector<6x3xi1>, vector<6x3xf32>
    %c3_i32_18 = arith.constant 3 : i32
    %88 = vector.broadcast %c3_i32_18 : i32 to vector<6x3xi32>
    %89 = arith.cmpi eq, %0, %88 : vector<6x3xi32>
    %c11 = arith.constant 11 : index
    %90 = memref.load %arg1[%c11] : memref<18xf32, #tpu.memory_space<smem>>
    %91 = vector.broadcast %90 : f32 to vector<6x3xf32>
    %92 = arith.select %89, %91, %87 : vector<6x3xi1>, vector<6x3xf32>
    %c4_i32_19 = arith.constant 4 : i32
    %93 = vector.broadcast %c4_i32_19 : i32 to vector<6x3xi32>
    %94 = arith.cmpi eq, %0, %93 : vector<6x3xi32>
    %c14 = arith.constant 14 : index
    %95 = memref.load %arg1[%c14] : memref<18xf32, #tpu.memory_space<smem>>
    %96 = vector.broadcast %95 : f32 to vector<6x3xf32>
    %97 = arith.select %94, %96, %92 : vector<6x3xi1>, vector<6x3xf32>
    %c5_i32_20 = arith.constant 5 : i32
    %98 = vector.broadcast %c5_i32_20 : i32 to vector<6x3xi32>
    %99 = arith.cmpi eq, %0, %98 : vector<6x3xi32>
    %c17 = arith.constant 17 : index
    %100 = memref.load %arg1[%c17] : memref<18xf32, #tpu.memory_space<smem>>
    %101 = vector.broadcast %100 : f32 to vector<6x3xf32>
    %102 = arith.select %99, %101, %97 : vector<6x3xi1>, vector<6x3xf32>
    %c2_21 = arith.constant 2 : index
    %c0_22 = arith.constant 0 : index
    %c0_23 = arith.constant 0 : index
    %103 = vector.load %arg0[%c2_21, %c0_22, %c0_23] : memref<3x6x3xf32, #tpu.memory_space<vmem>>, vector<1x6x3xf32>
    %104 = vector.shape_cast %103 : vector<1x6x3xf32> to vector<6x3xf32>
    %105 = arith.mulf %104, %102 : vector<6x3xf32>
    %106 = arith.addf %71, %105 : vector<6x3xf32>
    %107 = vector.extract_strided_slice %106 {offsets = [0, 0], sizes = [3, 3], strides = [1, 1]} : vector<6x3xf32> to vector<3x3xf32>
    %cst_24 = arith.constant dense<0.000000e+00> : vector<3xf32>
    %108 = vector.multi_reduction <add>, %107, %cst_24 [0] : vector<3x3xf32> to vector<3xf32>
    %109 = vector.shape_cast %108 : vector<3xf32> to vector<1x3xf32>
    %110 = vector.extract_strided_slice %106 {offsets = [3, 0], sizes = [3, 3], strides = [1, 1]} : vector<6x3xf32> to vector<3x3xf32>
    %cst_25 = arith.constant dense<0.000000e+00> : vector<3xf32>
    %111 = vector.multi_reduction <add>, %110, %cst_25 [0] : vector<3x3xf32> to vector<3xf32>
    %112 = vector.shape_cast %111 : vector<3xf32> to vector<1x3xf32>
    %113 = tpu.concatenate %109, %112 in 0 : vector<1x3xf32>, vector<1x3xf32> -> vector<2x3xf32>
    %cst_26 = arith.constant dense<0.000000e+00> : vector<2xf32>
    %114 = vector.multi_reduction <add>, %113, %cst_26 [1] : vector<2x3xf32> to vector<2xf32>
    %115 = vector.shape_cast %114 : vector<2xf32> to vector<2x1xf32>
    %cst_27 = arith.constant 0.333333343 : f32
    %116 = vector.broadcast %cst_27 : f32 to vector<2x1xf32>
    %117 = arith.mulf %115, %116 : vector<2x1xf32>
    %118 = vector.broadcast %117 : vector<2x1xf32> to vector<2x3xf32>
    %119 = arith.subf %113, %118 : vector<2x3xf32>
    %120 = arith.mulf %119, %119 : vector<2x3xf32>
    %cst_28 = arith.constant dense<0.000000e+00> : vector<2xf32>
    %121 = vector.multi_reduction <add>, %120, %cst_28 [1] : vector<2x3xf32> to vector<2xf32>
    %122 = vector.shape_cast %121 : vector<2xf32> to vector<2x1xf32>
    %cst_29 = arith.constant 0.333333343 : f32
    %123 = vector.broadcast %cst_29 : f32 to vector<2x1xf32>
    %124 = arith.mulf %122, %123 : vector<2x1xf32>
    %cst_30 = arith.constant 9.99999974E-6 : f32
    %125 = vector.broadcast %cst_30 : f32 to vector<2x1xf32>
    %126 = arith.addf %124, %125 : vector<2x1xf32>
    %127 = math.rsqrt %126 : vector<2x1xf32>
    %cst_31 = arith.constant 2.000000e+00 : f32
    %128 = vector.broadcast %cst_31 : f32 to vector<2x1xf32>
    %129 = arith.mulf %128, %127 : vector<2x1xf32>
    %130 = vector.broadcast %129 : vector<2x1xf32> to vector<2x3xf32>
    %131 = arith.mulf %119, %130 : vector<2x3xf32>
    %c0_32 = arith.constant 0 : index
    %c0_33 = arith.constant 0 : index
    %c0_34 = arith.constant 0 : index
    %132 = vector.load %arg2[%c0_32, %c0_33, %c0_34] : memref<1x2x3xf32, #tpu.memory_space<vmem>>, vector<1x2x3xf32>
    %133 = vector.shape_cast %132 : vector<1x2x3xf32> to vector<2x3xf32>
    %134 = vector.shape_cast %131 : vector<2x3xf32> to vector<1x2x3xf32>
    tpu.vector_store %arg2[%c0_32, %c0_33, %c0_34], %134 {strides = array<i32>} : memref<1x2x3xf32, #tpu.memory_space<vmem>>, vector<1x2x3xf32>,
    return
  }
}

</mosaic_0001>

<bundles_post_ra>
// kernel: model_forward.1
= control target key start
LH: loop header
LB: loop body
LE: loop exit
PB: predicated region body
PF: predicated region fallthrough
CT: control target
= control target key end

     0   :  { %7 = vsyncpa [#allocation4], 0  ;;  %s305_s0 = inlined_call_operand.vmem [shape: f32[3,6,3], index: 0, kind: input, shape index: {}]   ;;  %s306_s1 = inlined_call_operand.vmem [shape: f32[18], index: 1, kind: input, shape index: {}]   ;;  %s307_s2 = inlined_call_operand.hbm [shape: f32[1,2,3], index: 2, kind: output, shape index: {}]  }
   0x1   :  { %8 = vsyncpa [#allocation3], 0  ;;  %s16_s11 = sshll.u32 %s306_s1, 4  ;;  %s223_s12 = smov [#allocation2]   ;;  %s17_s11 = int_to_ptr.vmem [resolvable:$true] %s16_s11 }
   0x2   :  { %19 = dma.vmem_to_smem %s17_s11, 16, %s223_s12, [#allocation4]  }
   0x3   :  { %219 = dma.done.wait [#allocation4], 16  }
   0x4   :  { %220 = vsyncadd [#allocation4], 4294967280 }
   0x5   :  { %24 = sfence }
   0x6   :  { %v25_v0 = vlaneseq  ;;  %s28_s13 = sld [smem:[#allocation2]]  ;;  %v51_v21 = vld [vmem:[%s305_s0] sm:$0x3f]  ;;  %v171_v24 = vld [vmem:[%s305_s0 + $0x8] sm:$0x3f]  ;;  %vm98_vm6 = vcmask 18432  }
   0x7   :  { %s160_s14 = sld [smem:[#allocation2 + $0x3]]  ;;  %v178_v39 = vld [vmem:[%s305_s0 + $0x10] sm:$0x3f]  ;;  %vm116_vm7 = vcmask 1040384   ;;  %vm118_vm8 = vcmask 17408   ;;  %s224_s0 = smov [#allocation5]  }
   0x8   :  { %v243_v1 = vshrl.u32 %v25_v0, 7  ;;  %s161_s15 = sld [smem:[#allocation2 + $0x6]]  ;;  %s148_s8 = sshll.u32 %s224_s0, 4  ;;  %s149_s8 = int_to_ptr.vmem [resolvable:$true] %s148_s8 }
   0x9   :  { %s162_s16 = sld [smem:[#allocation2 + $0x9]]  ;;  %s150_s11 = sshll.u32 %s307_s2, 4  ;;  %s151_s11 = int_to_ptr.hbm [resolvable:$true] %s150_s11 }
   0xa   :  { %vm27_vm0 = vcmp.eq.s32.totalorder %v243_v1, 0  ;;  %s163_s17 = sld [smem:[#allocation2 + $0xc]]  ;;  %vm31_vm1 = vcmp.eq.s32.totalorder %v243_v1, 1  ;;  %vm35_vm2 = vcmp.eq.s32.totalorder %v243_v1, 2  ;;  %vm39_vm3 = vcmp.eq.s32.totalorder %v243_v1, 3 }
   0xb   :  { %s247_s18 = sld [smem:[#allocation2 + $0xf]]  ;;  %vm43_vm4 = vcmp.eq.s32.totalorder %v243_v1, 4  ;;  %vm47_vm5 = vcmp.eq.s32.totalorder %v243_v1, 5 }
   0xc   :  { %v29_v2 = vstv %s28_s13  ;;  %s165_s1 = sld [smem:[#allocation2 + $0x1]] }
   0xd   :  { %v30_v3 = vsel %vm27_vm0, %v29_v2, 0.0  ;;  %v33_v4 = vstv %s160_s14  ;;  %s166_s19 = sld [smem:[#allocation2 + $0x4]] }
   0xe   :  { %v34_v5 = vsel %vm31_vm1, %v33_v4, %v30_v3  ;;  %v37_v6 = vstv %s161_s15  ;;  %s167_s20 = sld [smem:[#allocation2 + $0x7]] }
   0xf   :  { %v38_v7 = vsel %vm35_vm2, %v37_v6, %v34_v5  ;;  %v41_v8 = vstv %s162_s16  ;;  %s168_s21 = sld [smem:[#allocation2 + $0xa]] }
  0x10   :  { %v42_v9 = vsel %vm39_vm3, %v41_v8, %v38_v7  ;;  %v45_v10 = vstv %s163_s17  ;;  %s169_s22 = sld [smem:[#allocation2 + $0xd]] }
  0x11   :  { %s170_s23 = sld [smem:[#allocation2 + $0x10]]  ;;  %v46_v12 = vsel %vm43_vm4, %v45_v10, %v42_v9  ;;  %v49_v13 = vstv %s247_s18 }
  0x12   :  { %v55_v11 = vstv %s165_s1  ;;  %s172_s24 = sld [smem:[#allocation2 + $0x2]]  ;;  %v50_v20 = vsel %vm47_vm5, %v49_v13, %v46_v12 }
  0x13   :  { %v56_v14 = vsel %vm27_vm0, %v55_v11, 0.0  ;;  %v58_v15 = vstv %s166_s19  ;;  %s173_s25 = sld [smem:[#allocation2 + $0x5]]  ;;  %v52_v29 = vmul.f32 %v51_v21, %v50_v20 }
  0x14   :  { %v59_v16 = vsel %vm31_vm1, %v58_v15, %v56_v14  ;;  %v61_v17 = vstv %s167_s20  ;;  %s174_s26 = sld [smem:[#allocation2 + $0x8]] }
  0x15   :  { %v62_v18 = vsel %vm35_vm2, %v61_v17, %v59_v16  ;;  %v64_v19 = vstv %s168_s21  ;;  %s175_s27 = sld [smem:[#allocation2 + $0xb]] }
  0x16   :  { %v65_v22 = vsel %vm39_vm3, %v64_v19, %v62_v18  ;;  %v67_v23 = vstv %s169_s22  ;;  %s176_s4 = sld [smem:[#allocation2 + $0xe]] }
  0x17   :  { %v68_v25 = vsel %vm43_vm4, %v67_v23, %v65_v22  ;;  %v70_v26 = vstv %s170_s23  ;;  %s177_s5 = sld [smem:[#allocation2 + $0x11]] }
  0x18   :  { %v71_v27 = vsel %vm47_vm5, %v70_v26, %v68_v25  ;;  %v77_v28 = vstv %s172_s24 }
  0x19   :  { %v74_v30 = vmul.f32 %v171_v24, %v71_v27  ;;  %v78_v31 = vsel %vm27_vm0, %v77_v28, 0.0  ;;  %v80_v32 = vstv %s173_s25 }
  0x1a   :  { %v81_v33 = vsel %vm31_vm1, %v80_v32, %v78_v31  ;;  %v83_v34 = vstv %s174_s26 }
  0x1b   :  { %v84_v35 = vsel %vm35_vm2, %v83_v34, %v81_v33  ;;  %v86_v36 = vstv %s175_s27  ;;  %v75_v40 = vadd.f32 %v74_v30, %v52_v29 }
  0x1c   :  { %v87_v37 = vsel %vm39_vm3, %v86_v36, %v84_v35  ;;  %v89_v38 = vstv %s176_s4 }
  0x1d   :  { %v90_v41 = vsel %vm43_vm4, %v89_v38, %v87_v37  ;;  %v92_v42 = vstv %s177_s5 }
  0x1e   :  { %v93_v43 = vsel %vm47_vm5, %v92_v42, %v90_v41 }
  0x1f   :  { %v96_v44 = vmul.f32 %v178_v39, %v93_v43 }
  0x21   :  { %v97_v45 = vadd.f32 %v96_v44, %v75_v40 }
  0x23   :  { %v99_v46 = vsel %vm98_vm6, %v97_v45, 0.0  ;;  %v107_v47 = vrot.slane %v97_v45, 3 }
  0x24   :  { %v100_v48 = vrot.slane %v99_v46, 4 }
  0x25   :  { %v109_v49 = vsel %vm98_vm6, %v107_v47, 0.0 }
  0x26   :  { %v101_v50 = vadd.f32 %v100_v48, %v99_v46  ;;  %v110_v51 = vrot.slane %v109_v49, 4 }
  0x28   :  { %v102_v52 = vrot.slane %v101_v50, 2  ;;  %v111_v53 = vadd.f32 %v110_v51, %v109_v49 }
  0x2a   :  { %v103_v54 = vadd.f32 %v102_v52, %v101_v50  ;;  %v112_v55 = vrot.slane %v111_v53, 2 }
  0x2c   :  { %v104_v56 = vrot.slane %v103_v54, 1  ;;  %v113_v57 = vadd.f32 %v112_v55, %v111_v53 }
  0x2e   :  { %v105_v58 = vadd.f32 %v104_v56, %v103_v54  ;;  %v114_v59 = vrot.slane %v113_v57, 1 }
  0x30   :  { %v115_v60 = vadd.f32 %v114_v59, %v113_v57 }
  0x32   :  { %v117_v61 = vsel %vm116_vm7, %v105_v58, %v115_v60 }
  0x33   :  { %v119_v62 = vsel %vm118_vm8, %v117_v61, 0.0 }
  0x34   :  { %120 = vadd.xlane.f32.xlu0 %v119_v62 }
  0xa7   :  { %v121_v63 = vpop.xlane.xlu0 %120 }
  0xa8   :  { %v122_v0 = vmul.f32 0.33333334, %v121_v63 }
  0xaa   :  { %v123_v1 = vsub.f32 %v117_v61, %v122_v0 }
  0xac   :  { %v124_v2 = vmul.f32 %v123_v1, %v123_v1 }
  0xae   :  { %v125_v3 = vsel %vm118_vm8, %v124_v2, 0.0 }
  0xaf   :  { %126 = vadd.xlane.f32.xlu0 %v125_v3 }
 0x122   :  { %v127_v4 = vpop.xlane.xlu0 %126 }
 0x123   :  { %v128_v5 = vmul.f32 0.33333334, %v127_v4 }
 0x125   :  { %v129_v6 = vadd.f32 1e-05, %v128_v5 }
 0x127   :  { %181 = vrsqrt.f32 %v129_v6  ;;  %vm136_vm10 = vweird.f32 %v129_v6 }
 0x12d   :  { %v182_v7 = vpop.eup %181 }
 0x12e   :  { %v131_v8 = vmul.f32 %v182_v7, %v129_v6  ;;  %vm137_vm9 = vweird.f32 %v182_v7 }
 0x12f   :  { %vm138_vm11 = vmor %vm136_vm10, %vm137_vm9 }
 0x130   :  { %v132_v9 = vmul.f32 %v182_v7, %v131_v8 }
 0x132   :  { %v133_v10 = vmul.f32 0.5, %v132_v9 }
 0x134   :  { %v134_v11 = vsub.f32 1.5, %v133_v10 }
 0x136   :  { %v135_v12 = vmul.f32 %v182_v7, %v134_v11 }
 0x138   :  { %v139_v13 = vsel %vm138_vm11, %v182_v7, %v135_v12 }
 0x139   :  { %v140_v14 = vmul.f32 2.0, %v139_v13 }
 0x13b   :  { %v141_v15 = vmul.f32 %v140_v14, %v123_v1 }
 0x13d   :  { %142 = vst.msk [vmem:[#allocation5] sm:$0x3] %vm118_vm8, %v141_v15 }
 0x13e   :  { %153 = dma.vmem_to_hbm [thread:$0]  %s149_s8, 32, %s151_s11, [#allocation3]  }
 0x13f   :  { %221 = dma.done.wait [#allocation3], 32  }
 0x140   :  { %222 = vsyncadd [#allocation3], 4294967264 }
 0x141   :  { %158 = vsyncpa [#allocation3], 1 }
 0x142   :  { %159 = vsyncpa [#allocation4], 1 }

</bundles_post_ra>
